<compile_context>
chip_gen: v6e
topology: v6e:2x2x1
jax: 0.10.0
libtpu: 0.0.40
codegen_flags: <defaults>
</compile_context>

<pallas_src>
import functools

import jax
import jax.numpy as jnp
from jax import lax
from jax.experimental import pallas as pl
from jax.experimental.pallas import tpu as pltpu

GN_GROUPS = 32
GN_EPS = 1e-6


# --------------------------------------------------------------------------- #
# Pass 1: GroupNorm-apply + fused K|V projection, once per token.
#   x tile is channel-major (C, Tn); K^T tile stays channel-major, V tile is
#   transposed once here (instead of a transposed-RHS matmul per (q, kv) pair).
# --------------------------------------------------------------------------- #
def _kv_precompute_kernel(x_ref, scale_ref, shift_ref, wkv_ref, bkv_ref,
                          kt_ref, v_ref):
    c = kt_ref.shape[1]
    h = (x_ref[0] * scale_ref[0] + shift_ref[0]).astype(jnp.bfloat16)      # (C, Tn)
    kvp = jnp.dot(wkv_ref[...], h,
                  preferred_element_type=jnp.float32) + bkv_ref[...]       # (2C, Tn)
    kt_ref[0] = kvp[:c, :].astype(jnp.bfloat16)                            # K^T (C, Tn)
    v_ref[0] = kvp[c:, :].T.astype(jnp.bfloat16)                           # V   (Tn, C)


# --------------------------------------------------------------------------- #
# Pass 2: q projection + flash attention (online softmax) + out proj + residual.
# --------------------------------------------------------------------------- #
def _attn_flash_kernel(x_q_ref, kt_ref, v_ref, scale_ref, shift_ref,
                       wq_ref, bq_ref, wo_ref, bo_ref, o_ref,
                       q_scr, m_scr, l_scr, acc_scr, *, tkv, kv_block):
    kv = pl.program_id(2)

    # -- init (per (b, q_tile)): running max / denom / accumulator and the q tile --
    @pl.when(kv == 0)
    def _():
        m_scr[...] = jnp.full_like(m_scr, -jnp.inf)
        l_scr[...] = jnp.zeros_like(l_scr)
        acc_scr[...] = jnp.zeros_like(acc_scr)
        # GroupNorm applied once per q tile; 1/sqrt(C) already folded into Wq / bq.
        h_q = (x_q_ref[0] * scale_ref[0] + shift_ref[0]).astype(jnp.bfloat16)  # (C, Tq)
        q_t = jnp.dot(wq_ref[...], h_q,
                      preferred_element_type=jnp.float32) + bq_ref[...]        # (C, Tq)
        q_scr[...] = q_t.T.astype(jnp.bfloat16)                                # (Tq, C)

    # -- kv tile: either the streamed block itself, or a slice of the resident K/V --
    if kv_block == tkv:
        k_tile = kt_ref[0]                                  # (C, Tkv) bf16
        v_tile = v_ref[0]                                   # (Tkv, C) bf16
    else:
        off = pl.multiple_of(kv * tkv, 128)
        k_tile = kt_ref[0, :, pl.ds(off, tkv)]
        v_tile = v_ref[0, pl.ds(off, tkv), :]

    # -- scores: plain (Tq,C)x(C,Tkv) MXU matmul (K already transposed) --
    s = jnp.dot(q_scr[...], k_tile, preferred_element_type=jnp.float32)    # (Tq, Tkv)

    # -- online softmax (f32 stats; p cast to bf16 right before the MXU) --
    m_prev = m_scr[...]
    m_new = jnp.maximum(m_prev, jnp.max(s, axis=-1, keepdims=True))
    alpha = jnp.exp(m_prev - m_new)
    p = jnp.exp(s - m_new)
    l_scr[...] = alpha * l_scr[...] + jnp.sum(p, axis=-1, keepdims=True)
    acc_scr[...] = alpha * acc_scr[...] + jnp.dot(
        p.astype(jnp.bfloat16), v_tile, preferred_element_type=jnp.float32)
    m_scr[...] = m_new

    # -- epilogue: deferred normalization, output projection, residual --
    @pl.when(kv == pl.num_programs(2) - 1)
    def _():
        att = acc_scr[...] * pl.reciprocal(l_scr[...], approx=True)        # (Tq, C)
        att_t = att.T.astype(jnp.bfloat16)                                 # (C, Tq)
        out_t = jnp.dot(wo_ref[...], att_t,
                        preferred_element_type=jnp.float32) + bo_ref[...]
        o_ref[0] = out_t + x_q_ref[0]


def _pick_tile(n, cap):
    for t in (512, 256, 128, 64, 32, 16, 8):
        if t <= cap and n % t == 0:
            return t
    return n


def attn_block_pallas(x_nchw, params, *, tq=None, tkv=None, tn=None,
                      kv_cache_budget_bytes=24 * 1024 * 1024):
    B, C, H, W = x_nchw.shape
    N = H * W
    assert C % GN_GROUPS == 0, "GroupNorm(32, C) requires C % 32 == 0"
    # TODO(synk): add a padding path for ragged C / N; this kernel assumes
    # lane-dense channels and spatial tiles.
    assert C % 128 == 0 and N % 128 == 0
    cg = C // GN_GROUPS

    tq = _pick_tile(N, 256) if tq is None else tq
    tkv = _pick_tile(N, 256) if tkv is None else tkv
    tn = _pick_tile(N, 512) if tn is None else tn
    assert N % tq == 0 and N % tkv == 0 and N % tn == 0

    # NCHW -> (B, C, N): a pure reshape (no relayout / extra HBM round trip).
    # TODO(synk): if the surrounding model can carry token-major activations,
    # take/return that layout directly and skip the channel-major x path.
    x_cn = x_nchw.reshape(B, C, N).astype(jnp.float32)

    # GroupNorm statistics as a tiny XLA reduction (centered variance), folded
    # into per-(batch, channel) scale / shift applied with one FMA in-kernel.
    xg = x_cn.reshape(B, GN_GROUPS, cg * N)
    mean_g = jnp.mean(xg, axis=-1)                                  # (B, G)
    var_g = jnp.var(xg, axis=-1)                                    # centered
    inv_g = lax.rsqrt(var_g + GN_EPS)
    mean_c = jnp.repeat(mean_g, cg, axis=-1)                        # (B, C)
    inv_c = jnp.repeat(inv_g, cg, axis=-1)
    gamma = params["gamma"].astype(jnp.float32)[None, :]
    beta = params["beta"].astype(jnp.float32)[None, :]
    scale = (inv_c * gamma).reshape(B, C, 1)
    shift = (beta - mean_c * inv_c * gamma).reshape(B, C, 1)

    # Weight prep: bf16 MXU operands, f32 biases, 1/sqrt(C) folded into Wq / bq.
    qk_scale = float(C) ** -0.5
    wq_s = (params["wq"] * qk_scale).astype(jnp.bfloat16)                        # (C, C)
    bq_s = (params["bq"] * qk_scale).reshape(C, 1).astype(jnp.float32)
    wkv = jnp.concatenate([params["wk"], params["wv"]], 0).astype(jnp.bfloat16)  # (2C, C)
    bkv = jnp.concatenate([params["bk"], params["bv"]]).reshape(2 * C, 1).astype(jnp.float32)
    wo = params["wo"].astype(jnp.bfloat16)                                       # (C, C)
    bo = params["bo"].reshape(C, 1).astype(jnp.float32)

    # ---------------- pass 1: K^T / V precompute (once per token) ----------------
    kt, v = pl.pallas_call(
        _kv_precompute_kernel,
        out_shape=(jax.ShapeDtypeStruct((B, C, N), jnp.bfloat16),   # K^T
                   jax.ShapeDtypeStruct((B, N, C), jnp.bfloat16)),  # V
        grid=(B, N // tn),
        in_specs=[
            pl.BlockSpec((1, C, tn), lambda b, ni: (b, 0, ni)),     # x tile (C, Tn)
            pl.BlockSpec((1, C, 1), lambda b, ni: (b, 0, 0)),       # GN scale
            pl.BlockSpec((1, C, 1), lambda b, ni: (b, 0, 0)),       # GN shift
            pl.BlockSpec((2 * C, C), lambda b, ni: (0, 0)),         # [Wk;Wv]
            pl.BlockSpec((2 * C, 1), lambda b, ni: (0, 0)),         # [bk;bv]
        ],
        out_specs=(pl.BlockSpec((1, C, tn), lambda b, ni: (b, 0, ni)),
                   pl.BlockSpec((1, tn, C), lambda b, ni: (b, ni, 0))),
        compiler_params=pltpu.CompilerParams(
            dimension_semantics=("parallel", "parallel")),
    )(x_cn, scale, shift, wkv, bkv)

    # Keep K^T / V VMEM-resident across q tiles when they fit the (v7x-safe)
    # budget; otherwise stream tkv-wide tiles with a 3-deep pipeline.
    resident = 2 * (2 * N * C * 2) <= kv_cache_budget_bytes
    kv_block = N if resident else tkv
    kv_bufs = 2 if resident else 3
    if resident:
        kt_spec = pl.BlockSpec((1, C, N), lambda b, qi, ki: (b, 0, 0))
        v_spec = pl.BlockSpec((1, N, C), lambda b, qi, ki: (b, 0, 0))
    else:
        kt_spec = pl.BlockSpec((1, C, tkv), lambda b, qi, ki: (b, 0, ki),
                               pipeline_mode=pl.Buffered(3))
        v_spec = pl.BlockSpec((1, tkv, C), lambda b, qi, ki: (b, ki, 0),
                              pipeline_mode=pl.Buffered(3))

    # VMEM footprint estimate (+margin), capped at 48 MiB (safe on v7x's 64 MiB).
    est = (2 * C * tq * 4                          # x_q (f32), double-buffered
           + kv_bufs * C * kv_block * 2            # K^T (bf16)
           + kv_bufs * kv_block * C * 2            # V (bf16)
           + 2 * C * tq * 4                        # output (f32)
           + 2 * (2 * C * C * 2 + 6 * C * 4)       # weights / biases / scale / shift
           + tq * C * 2 + tq * C * 4 + 2 * tq * 4  # scratch
           + 4 * tq * tkv * 4)                     # score / prob temporaries headroom
    vmem_limit = int(min(48 * 2**20, max(16 * 2**20, 2 * est)))

    # ---------------- pass 2: flash attention ----------------
    kernel = functools.partial(_attn_flash_kernel, tkv=tkv, kv_block=kv_block)
    out_cn = pl.pallas_call(
        kernel,
        out_shape=jax.ShapeDtypeStruct((B, C, N), jnp.float32),
        grid=(B, N // tq, N // tkv),
        in_specs=[
            pl.BlockSpec((1, C, tq), lambda b, qi, ki: (b, 0, qi)),   # x (q tile + residual)
            kt_spec,                                                  # K^T (bf16)
            v_spec,                                                   # V (bf16)
            pl.BlockSpec((1, C, 1), lambda b, qi, ki: (b, 0, 0)),     # GN scale
            pl.BlockSpec((1, C, 1), lambda b, qi, ki: (b, 0, 0)),     # GN shift
            pl.BlockSpec((C, C), lambda b, qi, ki: (0, 0)),           # Wq (scaled)
            pl.BlockSpec((C, 1), lambda b, qi, ki: (0, 0)),           # bq (scaled)
            pl.BlockSpec((C, C), lambda b, qi, ki: (0, 0)),           # Wo
            pl.BlockSpec((C, 1), lambda b, qi, ki: (0, 0)),           # bo
        ],
        out_specs=pl.BlockSpec((1, C, tq), lambda b, qi, ki: (b, 0, qi)),
        scratch_shapes=[
            pltpu.VMEM((tq, C), jnp.bfloat16),   # q tile (token-major, pre-scaled)
            pltpu.VMEM((tq, 1), jnp.float32),    # running row max
            pltpu.VMEM((tq, 1), jnp.float32),    # running row denom
            pltpu.VMEM((tq, C), jnp.float32),    # output accumulator
        ],
        compiler_params=pltpu.CompilerParams(
            dimension_semantics=("parallel", "parallel", "arbitrary"),
            vmem_limit_bytes=vmem_limit),
    )(x_cn, kt, v, scale, shift, wq_s, bq_s, wo, bo)

    # (B, C, N) -> NCHW is a free reshape.
    return out_cn.reshape(B, C, H, W)


# --------------------------------------------------------------------------- #
# Pure-JAX f32 reference mirroring the PyTorch forward.
# --------------------------------------------------------------------------- #
def attn_block_reference(x_nchw, params):
    B, C, H, W = x_nchw.shape
    cg = C // GN_GROUPS
    x = x_nchw.astype(jnp.float32)

    xg = x.reshape(B, GN_GROUPS, cg, H, W)
    mean = jnp.mean(xg, axis=(2, 3, 4), keepdims=True)
    var = jnp.mean((xg - mean) ** 2, axis=(2, 3, 4), keepdims=True)
    h = ((xg - mean) / jnp.sqrt(var + GN_EPS)).reshape(B, C, H, W)
    h = h * params["gamma"].reshape(1, C, 1, 1) + params["beta"].reshape(1, C, 1, 1)

    def conv1x1(t, w, b):
        return jnp.einsum("oc,bchw->bohw", w, t) + b.reshape(1, C, 1, 1)

    q = conv1x1(h, params["wq"], params["bq"])
    k = conv1x1(h, params["wk"], params["bk"])
    v = conv1x1(h, params["wv"], params["bv"])

    N = H * W
    qf = jnp.transpose(q.reshape(B, C, N), (0, 2, 1))     # (B, N, C)
    kf = k.reshape(B, C, N)                                # (B, C, N)
    w = jnp.einsum("bnc,bcm->bnm", qf, kf) * (float(C) ** -0.5)
    w = jax.nn.softmax(w, axis=2)
    vf = v.reshape(B, C, N)
    hattn = jnp.einsum("bcm,bnm->bcn", vf, w).reshape(B, C, H, W)
    out = conv1x1(hattn, params["wo"], params["bo"])
    return out + x


def make_params(key, C):
    ks = jax.random.split(key, 10)
    p = {}
    p["gamma"] = 1.0 + 0.1 * jax.random.normal(ks[0], (C,), jnp.float32)
    p["beta"] = 0.1 * jax.random.normal(ks[1], (C,), jnp.float32)
    scale = 1.0 / (C ** 0.5)
    p["wq"] = scale * jax.random.normal(ks[2], (C, C), jnp.float32)
    p["bq"] = 0.05 * jax.random.normal(ks[3], (C,), jnp.float32)
    p["wk"] = scale * jax.random.normal(ks[4], (C, C), jnp.float32)
    p["bk"] = 0.05 * jax.random.normal(ks[5], (C,), jnp.float32)
    p["wv"] = scale * jax.random.normal(ks[6], (C, C), jnp.float32)
    p["bv"] = 0.05 * jax.random.normal(ks[7], (C,), jnp.float32)
    p["wo"] = scale * jax.random.normal(ks[8], (C, C), jnp.float32)
    p["bo"] = 0.05 * jax.random.normal(ks[9], (C,), jnp.float32)
    return p


if __name__ == "__main__":
    # GroupNorm(32, C) requires C % 32 == 0; C=128 keeps the lane axis dense.
    # N = 16*16 = 256 exercises both single- and multi-step kv loops below.
    B, C, H, W = 2, 128, 16, 16
    key = jax.random.PRNGKey(0)
    kx, kp = jax.random.split(key)
    x = jax.random.normal(kx, (B, C, H, W), jnp.float32)
    params = make_params(kp, C)

    ref = jax.block_until_ready(attn_block_reference(x, params))

    configs = [
        dict(),                                           # tq=tkv=256, resident K/V
        dict(tq=128, tkv=128),                            # resident K/V, dynamic kv slices
        dict(tq=128, tkv=128, kv_cache_budget_bytes=0),   # streamed kv tiles + Buffered(3)
    ]
    for cfg in configs:
        out = jax.block_until_ready(attn_block_pallas(x, params, **cfg))
        assert out.shape == (B, C, H, W)
        # Tolerance reflects bf16 MXU operands (f32 accumulation) vs. the f32 reference.
        assert jnp.allclose(out, ref, rtol=2e-2, atol=2e-2), (
            f"cfg={cfg}: max abs diff {jnp.max(jnp.abs(out - ref))}")
    print("KERNEL_OK")
</pallas_src>

<mosaic_0001>
module attributes {stable_mosaic.version = 11 : i64} {
  func.func @_kv_precompute_kernel(%arg0: i32, %arg1: i32, %arg2: memref<1x128x256xf32, #tpu.memory_space<vmem>>, %arg3: memref<1x128x1xf32, #tpu.memory_space<vmem>>, %arg4: memref<1x128x1xf32, #tpu.memory_space<vmem>>, %arg5: memref<256x128xbf16, #tpu.memory_space<vmem>>, %arg6: memref<256x1xf32, #tpu.memory_space<vmem>>, %arg7: memref<1x128x256xbf16, #tpu.memory_space<vmem>>, %arg8: memref<1x256x128xbf16, #tpu.memory_space<vmem>>) attributes {dimension_semantics = [#tpu.dimension_semantics<parallel>, #tpu.dimension_semantics<parallel>], iteration_bounds = array<i64: 2, 1>, scalar_prefetch = 0 : i64, scratch_operands = 0 : i64, tpu.core_type = #tpu.core_type<tc>, window_params = [{transform_indices = @transform_0, window_bounds = array<i64: 1, 128, 256>}, {transform_indices = @transform_1, window_bounds = array<i64: 1, 128, 1>}, {transform_indices = @transform_2, window_bounds = array<i64: 1, 128, 1>}, {pipeline_mode = #tpu.pipeline_mode<synchronous>, transform_indices = @transform_3, window_bounds = array<i64: 256, 128>}, {pipeline_mode = #tpu.pipeline_mode<synchronous>, transform_indices = @transform_4, window_bounds = array<i64: 256, 1>}, {transform_indices = @transform_5, window_bounds = array<i64: 1, 128, 256>}, {transform_indices = @transform_6, window_bounds = array<i64: 1, 256, 128>}]} {
    %c0 = arith.constant 0 : index
    %c0_0 = arith.constant 0 : index
    %c0_1 = arith.constant 0 : index
    %0 = vector.load %arg2[%c0, %c0_0, %c0_1] : memref<1x128x256xf32, #tpu.memory_space<vmem>>, vector<1x128x256xf32>
    %1 = vector.shape_cast %0 : vector<1x128x256xf32> to vector<128x256xf32>
    %c0_2 = arith.constant 0 : index
    %c0_3 = arith.constant 0 : index
    %c0_4 = arith.constant 0 : index
    %2 = vector.load %arg3[%c0_2, %c0_3, %c0_4] : memref<1x128x1xf32, #tpu.memory_space<vmem>>, vector<1x128x1xf32>
    %3 = vector.shape_cast %2 : vector<1x128x1xf32> to vector<128x1xf32>
    %4 = vector.broadcast %3 : vector<128x1xf32> to vector<128x256xf32>
    %5 = arith.mulf %1, %4 : vector<128x256xf32>
    %c0_5 = arith.constant 0 : index
    %c0_6 = arith.constant 0 : index
    %c0_7 = arith.constant 0 : index
    %6 = vector.load %arg4[%c0_5, %c0_6, %c0_7] : memref<1x128x1xf32, #tpu.memory_space<vmem>>, vector<1x128x1xf32>
    %7 = vector.shape_cast %6 : vector<1x128x1xf32> to vector<128x1xf32>
    %8 = vector.broadcast %7 : vector<128x1xf32> to vector<128x256xf32>
    %9 = arith.addf %5, %8 : vector<128x256xf32>
    %10 = arith.truncf %9 : vector<128x256xf32> to vector<128x256xbf16>
    %c0_8 = arith.constant 0 : index
    %c0_9 = arith.constant 0 : index
    %11 = vector.load %arg5[%c0_8, %c0_9] : memref<256x128xbf16, #tpu.memory_space<vmem>>, vector<256x128xbf16>
    %cst = arith.constant dense<0.000000e+00> : vector<256x256xf32>
    %12 = tpu.matmul %11, %10, %cst {dimension_numbers = #tpu.dot_dimension_numbers<[1], [0], [0], [1], [0, 0, 1, 1], [], []>} : vector<256x128xbf16>, vector<128x256xbf16>, vector<256x256xf32> -> vector<256x256xf32>
    %c0_10 = arith.constant 0 : index
    %c0_11 = arith.constant 0 : index
    %13 = vector.load %arg6[%c0_10, %c0_11] : memref<256x1xf32, #tpu.memory_space<vmem>>, vector<256x1xf32>
    %14 = vector.broadcast %13 : vector<256x1xf32> to vector<256x256xf32>
    %15 = arith.addf %12, %14 : vector<256x256xf32>
    %16 = vector.extract_strided_slice %15 {offsets = [0, 0], sizes = [128, 256], strides = [1, 1]} : vector<256x256xf32> to vector<128x256xf32>
    %17 = arith.truncf %16 : vector<128x256xf32> to vector<128x256xbf16>
    %c0_12 = arith.constant 0 : index
    %c0_13 = arith.constant 0 : index
    %c0_14 = arith.constant 0 : index
    %18 = vector.load %arg7[%c0_12, %c0_13, %c0_14] : memref<1x128x256xbf16, #tpu.memory_space<vmem>>, vector<1x128x256xbf16>
    %19 = vector.shape_cast %18 : vector<1x128x256xbf16> to vector<128x256xbf16>
    %20 = vector.shape_cast %17 : vector<128x256xbf16> to vector<1x128x256xbf16>
    tpu.vector_store %arg7[%c0_12, %c0_13, %c0_14], %20 {strides = array<i32>} : memref<1x128x256xbf16, #tpu.memory_space<vmem>>, vector<1x128x256xbf16>,
    %21 = vector.extract_strided_slice %15 {offsets = [128, 0], sizes = [128, 256], strides = [1, 1]} : vector<256x256xf32> to vector<128x256xf32>
    %22 = tpu.transpose %21, [1, 0] : vector<128x256xf32> -> vector<256x128xf32>
    %23 = arith.truncf %22 : vector<256x128xf32> to vector<256x128xbf16>
    %c0_15 = arith.constant 0 : index
    %c0_16 = arith.constant 0 : index
    %c0_17 = arith.constant 0 : index
    %24 = vector.load %arg8[%c0_15, %c0_16, %c0_17] : memref<1x256x128xbf16, #tpu.memory_space<vmem>>, vector<1x256x128xbf16>
    %25 = vector.shape_cast %24 : vector<1x256x128xbf16> to vector<256x128xbf16>
    %26 = vector.shape_cast %23 : vector<256x128xbf16> to vector<1x256x128xbf16>
    tpu.vector_store %arg8[%c0_15, %c0_16, %c0_17], %26 {strides = array<i32>} : memref<1x256x128xbf16, #tpu.memory_space<vmem>>, vector<1x256x128xbf16>,
    return
  }
  func.func @transform_0(%arg0: i32, %arg1: i32) -> (i32, i32, i32) {
    %c0_i32 = arith.constant 0 : i32
    %c0_i32_0 = arith.constant 0 : i32
    return %arg0, %c0_i32, %arg1 : i32, i32, i32
  }
  func.func @transform_1(%arg0: i32, %arg1: i32) -> (i32, i32, i32) {
    %c0_i32 = arith.constant 0 : i32
    %c0_i32_0 = arith.constant 0 : i32
    %c0_i32_1 = arith.constant 0 : i32
    return %arg0, %c0_i32, %c0_i32_0 : i32, i32, i32
  }
  func.func @transform_2(%arg0: i32, %arg1: i32) -> (i32, i32, i32) {
    %c0_i32 = arith.constant 0 : i32
    %c0_i32_0 = arith.constant 0 : i32
    %c0_i32_1 = arith.constant 0 : i32
    return %arg0, %c0_i32, %c0_i32_0 : i32, i32, i32
  }
  func.func @transform_3(%arg0: i32, %arg1: i32) -> (i32, i32) {
    %c0_i32 = arith.constant 0 : i32
    %c0_i32_0 = arith.constant 0 : i32
    %c0_i32_1 = arith.constant 0 : i32
    return %c0_i32, %c0_i32_0 : i32, i32
  }
  func.func @transform_4(%arg0: i32, %arg1: i32) -> (i32, i32) {
    %c0_i32 = arith.constant 0 : i32
    %c0_i32_0 = arith.constant 0 : i32
    %c0_i32_1 = arith.constant 0 : i32
    return %c0_i32, %c0_i32_0 : i32, i32
  }
  func.func @transform_5(%arg0: i32, %arg1: i32) -> (i32, i32, i32) {
    %c0_i32 = arith.constant 0 : i32
    %c0_i32_0 = arith.constant 0 : i32
    return %arg0, %c0_i32, %arg1 : i32, i32, i32
  }
  func.func @transform_6(%arg0: i32, %arg1: i32) -> (i32, i32, i32) {
    %c0_i32 = arith.constant 0 : i32
    %c0_i32_0 = arith.constant 0 : i32
    return %arg0, %arg1, %c0_i32 : i32, i32, i32
  }
}

</mosaic_0001>

<bundles_post_ra>
// kernel: tpu_custom_call.1
= control target key start
LH: loop header
LB: loop body
LE: loop exit
PB: predicated region body
PF: predicated region fallthrough
CT: control target
= control target key end

     0   :  { %12 = vsyncpa [#allocation3], 0  ;;  %s2731_s0 = inlined_call_operand.vmem [shape: f32[2,128,256], index: 0, kind: input, shape index: {}]   ;;  %s2732_s1 = inlined_call_operand.vmem [shape: f32[2,128,1], index: 1, kind: input, shape index: {}]   ;;  %s2733_s2 = inlined_call_operand.vmem [shape: f32[2,128,1], index: 2, kind: input, shape index: {}]   ;;  %s2734_s3 = inlined_call_operand.vmem [shape: bf16[256,128], index: 3, kind: input, shape index: {}]   ;;  %s2735_s4 = inlined_call_operand.vmem [shape: f32[256,1], index: 4, kind: input, shape index: {}]   ;;  %s2736_s5 = inlined_call_operand.hbm [shape: bf16[2,128,256], index: 5, kind: output, shape index: {0}]   ;;  %s2737_s6 = inlined_call_operand.hbm [shape: bf16[2,256,128], index: 6, kind: output, shape index: {1}]  }
   0x1   :  { %14 = vsyncpa [#allocation3 + $0x1], 0 }
   0x2   :  { %15 = vsyncpa [#allocation5], 0 }
   0x3   :  { %17 = vsyncpa [#allocation5 + $0x1], 0  ;;  %s2260_s21 = smov 0   ;;  %s2262_s22 = smov 0  }
   0x4   :  { %s2264_s23 = smov 0   ;;  %s2266_s24 = smov 0  }
   0x5   :  { %s2268_s25 = smov 0   ;;  %s2270_s26 = smov 0  }
   0x6 LB: > { %s1666_s27 = sadd.s32 4294967295, %s2216_s26   ;;  %s1667_s28 = sadd.s32 4294967294, %s2216_s26   ;;  %s2216_s26 = sphi %s2270_s26, %s23_s26   ;;  %s2212_s25 = sphi %s2268_s25, %s2746_s25   ;;  %s2208_s24 = sphi %s2266_s24, %s2745_s24   ;;  %s2204_s23 = sphi %s2264_s23, %s2744_s23   ;;  %s2200_s22 = sphi %s2262_s22, %s2743_s22   ;;  %s2196_s21 = sphi %s2260_s21, %s2742_s21  }
   0x7   : > { %s35_s29 = sadd.s32 1, %s2212_s25  ;;  %s166_s30 = sadd.s32 1, %s2204_s23 }
   0x8   : > { %p37_p0 = scmp.ge.s32.totalorder %s35_s29, 2  ;;  %p176_p1 = scmp.ne.s32.totalorder %s2204_s23, %s2200_s22 }
   0x9   : > { %p177_p2 = scmp.eq.s32.totalorder %s1666_s27, 1  ;;  %p182_p3 = scmp.ne.s32.totalorder %s2200_s22, %s2196_s21 }
   0xa   : > { %s2748_s29 = smov (%p37_p0, %s35_s29), 0  ;;  %p183_p5 = scmp.eq.s32.totalorder %s1667_s28, 1 }
   0xb   : > { %p2300_p4 = por %p177_p2, %p176_p1  ;;  %s161_s8 = ssub.s32 %s2212_s25, %s2748_s29 }
   0xc   : > { %p1670_p6 = scmp.ge.s32.totalorder %s2216_s26, 1  ;;  %p164_p7 = scmp.eq.s32.totalorder %s161_s8, 0 }
   0xd   : > { %p2307_p8 = por %p183_p5, %p182_p3  ;;  %p264_p9 = scmp.lt.s32.totalorder %s2216_s26, 3 }
   0xe   : > { %s2313_s10 = scalar_select %p164_p7, %s2204_s23, %s166_s30  }
   0xf   : > { %p265_p10 = pnand %p1670_p6, %p264_p9 }
  0x10   : > { %p314_p11 = scmp.lt.s32.totalorder (!%p265_p10), %s2208_s24, 1  ;;  %s2219_s27 = smov (!%p265_p10), [#allocation2]  }
  0x11   : > { %268 = sbr.rel (%p265_p10) target bundleno = 622 (0x26e), region = 40  ;;  %s2114_s28 = sshll.u32 (!%p265_p10), %s2219_s27, 4  ;;  %s2115_s28 = int_to_ptr.vmem [resolvable:$false] %s2114_s28 }
  0x12   : > { %s2116_s30 = scalar_lea.vmem (!%p265_p10), %s2115_s28, 4096 }
  0x16   : > { %v2218_v0 = vmov 0   ;;  %s2319_s11 = scalar_select %p314_p11, %s2208_s24, 1  ;;  %v673_v33 = vld [vmem:[%s2735_s4 + $0x8] sm:$0xff]  ;;  %v672_v34 = vld [vmem:[%s2735_s4] sm:$0xff]  ;;  %v675_v35 = vld [vmem:[%s2735_s4 + $0x18] sm:$0xff] }
  0x17   : > { %1981 = vset.pattern.permute.xlu1 %v2218_v0  ;;  %1980 = vset.pattern.permute.xlu0 %v2218_v0  ;;  %v674_v36 = vld [vmem:[%s2735_s4 + $0x10] sm:$0xff]  ;;  %v677_v37 = vld [vmem:[%s2735_s4 + $0x28] sm:$0xff]  ;;  %v676_v38 = vld [vmem:[%s2735_s4 + $0x20] sm:$0xff] }
  0x18   : > { %992 = vmatprep.mubr.bf16.mxu0 %v2218_v0  ;;  %1072 = vmatprep.mubr.bf16.mxu1 %v2218_v0  ;;  %s1752_s12 = sshll.u32 %s2319_s11, 7  ;;  %v679_v39 = vld [vmem:[%s2735_s4 + $0x38] sm:$0xff]  ;;  %v678_v40 = vld [vmem:[%s2735_s4 + $0x30] sm:$0xff]  ;;  %v681_v41 = vld [vmem:[%s2735_s4 + $0x48] sm:$0xff] }
  0x19   : > { %s2327_s15 = scalar_lea.vmem %s2733_s2, %s1752_s12  ;;  %s2333_s18 = scalar_lea.vmem %s2732_s1, %s1752_s12  ;;  %v680_v42 = vld [vmem:[%s2735_s4 + $0x40] sm:$0xff]  ;;  %v682_v44 = vld [vmem:[%s2735_s4 + $0x50] sm:$0xff]  ;;  %v689_v46 = vld [vmem:[%s2735_s4 + $0x88] sm:$0xff] }
  0x1a   : > { %v510_v1 = vld [vmem:[%s2327_s15 + $0x70] sm:$0xff]  ;;  %v511_v3 = vld [vmem:[%s2327_s15 + $0x78] sm:$0xff]  ;;  %v381_v5 = vld [vmem:[%s2333_s18 + $0x68] sm:$0xff]  ;;  %s1751_s12 = sshll.u32 %s2319_s11, 8 }
  0x1b   : > { %584 = vperm.xlu1 %1981, %v510_v1   ;;  %v382_v2 = vld [vmem:[%s2333_s18 + $0x70] sm:$0xff]  ;;  %v383_v4 = vld [vmem:[%s2333_s18 + $0x78] sm:$0xff]  ;;  %v380_v6 = vld [vmem:[%s2333_s18 + $0x60] sm:$0xff]  ;;  %s2460_s17 = scalar_lea.vmem %s2731_s0, %s1751_s12  ;;  %s2577_s12 = sand.u32 1, %s2200_s22  }
  0x1c   : > { %456 = vperm.xlu0 %1980, %v382_v2   ;;  %v509_v7 = vld [vmem:[%s2327_s15 + $0x68] sm:$0xff]  ;;  %v508_v8 = vld [vmem:[%s2327_s15 + $0x60] sm:$0xff]  ;;  %v379_v9 = vld [vmem:[%s2333_s18 + $0x58] sm:$0xff]  ;;  %s1671_s13 = sshll.u32 %s2577_s12, 7  ;;  %s1490_s11 = scalar_lea.sflag [#allocation3], %s2577_s12 }
  0x1d   : > { %v378_v10 = vld [vmem:[%s2333_s18 + $0x50] sm:$0xff]  ;;  %v507_v11 = vld [vmem:[%s2327_s15 + $0x58] sm:$0xff]  ;;  %v377_v13 = vld [vmem:[%s2333_s18 + $0x48] sm:$0xff]  ;;  %s2582_s14 = scalar_lea.vmem [#allocation2], %s1671_s13 }
  0x1e   : > { %v506_v12 = vld [vmem:[%s2327_s15 + $0x50] sm:$0xff]  ;;  %v376_v14 = vld [vmem:[%s2333_s18 + $0x40] sm:$0xff]  ;;  %v505_v15 = vld [vmem:[%s2327_s15 + $0x48] sm:$0xff]  ;;  %s1510_s16 = sshll.u32 %s2582_s14, 4  ;;  %s2631_s16 = int_to_ptr.vmem [resolvable:$true] %s1510_s16 }
  0x1f   : > { %589 = vperm.xlu1 %1981, %v511_v3   ;;  %v504_v16 = vld [vmem:[%s2327_s15 + $0x40] sm:$0xff]  ;;  %v375_v17 = vld [vmem:[%s2333_s18 + $0x38] sm:$0xff]  ;;  %v374_v18 = vld [vmem:[%s2333_s18 + $0x30] sm:$0xff]  ;;  %s2110_s20 = scalar_lea.vmem %s2631_s16, 2048  ;;  %p2117_p1 = scmp.lt.s32.totalorder %s2631_s16, %s2115_s28 }
  0x20   : > { %461 = vperm.xlu0 %1980, %v383_v4   ;;  %v503_v19 = vld [vmem:[%s2327_s15 + $0x38] sm:$0xff]  ;;  %v502_v20 = vld [vmem:[%s2327_s15 + $0x30] sm:$0xff]  ;;  %v373_v21 = vld [vmem:[%s2333_s18 + $0x28] sm:$0xff]  ;;  %p2111_p12 = scmp.ne.s32.totalorder %s2631_s16, %s2110_s20  ;;  %p2118_p2 = scmp.lt.s32.totalorder %s2116_s30, %s2110_s20 }
  0x21   : > { %v372_v22 = vld [vmem:[%s2333_s18 + $0x20] sm:$0xff]  ;;  %v501_v23 = vld [vmem:[%s2327_s15 + $0x28] sm:$0xff]  ;;  %v371_v25 = vld [vmem:[%s2333_s18 + $0x18] sm:$0xff] }
  0x22   : > { %v500_v24 = vld [vmem:[%s2327_s15 + $0x20] sm:$0xff]  ;;  %v370_v26 = vld [vmem:[%s2333_s18 + $0x10] sm:$0xff]  ;;  %v499_v27 = vld [vmem:[%s2327_s15 + $0x18] sm:$0xff]  ;;  %p2112_p13 = pnand %p2111_p12, %p2300_p4  ;;  %p2119_p3 = por %p2118_p2, %p2117_p1 }
  0x23   : > { %451 = vperm.xlu1 %1981, %v381_v5   ;;  %v498_v28 = vld [vmem:[%s2327_s15 + $0x10] sm:$0xff]  ;;  %v369_v29 = vld [vmem:[%s2333_s18 + $0x8] sm:$0xff]  ;;  %v368_v30 = vld [vmem:[%s2333_s18] sm:$0xff] }
  0x24   : > { %446 = vperm.xlu0 %1980, %v380_v6   ;;  %v497_v31 = vld [vmem:[%s2327_s15 + $0x8] sm:$0xff]  ;;  %v496_v32 = vld [vmem:[%s2327_s15] sm:$0xff]  ;;  %v690_v45 = vld [vmem:[%s2735_s4 + $0x90] sm:$0xff]  ;;  %s2738_s15 = sshll.u32 %s2208_s24, 11  ;;  %p2113_p0 = pneg %p2112_p13 }
  0x25   : > { %v688_v43 = vld [vmem:[%s2735_s4 + $0x80] sm:$0xff]  ;;  %v691_v48 = vld [vmem:[%s2735_s4 + $0x98] sm:$0xff]  ;;  %v694_v49 = vld [vmem:[%s2735_s4 + $0xb0] sm:$0xff]  ;;  %s2629_s19 = scalar_lea.hbm %s2736_s5, %s2738_s15 }
  0x26   : > { %v692_v47 = vld [vmem:[%s2735_s4 + $0xa0] sm:$0xff]  ;;  %v693_v50 = vld [vmem:[%s2735_s4 + $0xa8] sm:$0xff]  ;;  %v695_v52 = vld [vmem:[%s2735_s4 + $0xb8] sm:$0xff]  ;;  %p2120_p5 = pnand %p2119_p3, %p2113_p0 }
  0x27   : > { %579 = vperm.xlu1 %1981, %v509_v7   ;;  %v696_v51 = vld [vmem:[%s2735_s4 + $0xc0] sm:$0xff]  ;;  %v698_v53 = vld [vmem:[%s2735_s4 + $0xd0] sm:$0xff]  ;;  %v697_v54 = vld [vmem:[%s2735_s4 + $0xc8] sm:$0xff] }
  0x28   : > { %574 = vperm.xlu0 %1980, %v508_v8   ;;  %v700_v55 = vld [vmem:[%s2735_s4 + $0xe0] sm:$0xff]  ;;  %v699_v56 = vld [vmem:[%s2735_s4 + $0xd8] sm:$0xff]  ;;  %v702_v57 = vld [vmem:[%s2735_s4 + $0xf0] sm:$0xff] }
  0x29   : > { %v701_v58 = vld [vmem:[%s2735_s4 + $0xe8] sm:$0xff]  ;;  %v683_v59 = vld [vmem:[%s2735_s4 + $0x58] sm:$0xff]  ;;  %v684_v62 = vld [vmem:[%s2735_s4 + $0x60] sm:$0xff] }
  0x2a   : > { %v703_v60 = vld [vmem:[%s2735_s4 + $0xf8] sm:$0xff]  ;;  %v685_v61 = vld [vmem:[%s2735_s4 + $0x68] sm:$0xff]  ;;  %v686_v1 = vld [vmem:[%s2735_s4 + $0x70] sm:$0xff] }
  0x2b   : > { %441 = vperm.xlu1 %1981, %v379_v9   ;;  %v687_v63 = vld [vmem:[%s2735_s4 + $0x78] sm:$0xff]  ;;  %v364_v4 = vld [vmem:[%s2460_s17 + $0xe0] sm:$0xff]  ;;  %v365_v5 = vld [vmem:[%s2460_s17 + $0xe8] sm:$0xff] }
  0x2c   : > { %436 = vperm.xlu0 %1980, %v378_v10   ;;  %v366_v6 = vld [vmem:[%s2460_s17 + $0xf0] sm:$0xff]  ;;  %v367_v7 = vld [vmem:[%s2460_s17 + $0xf8] sm:$0xff] }
  0x2f   : > { %569 = vperm.xlu1 %1981, %v507_v11  }
  0x30   : > { %564 = vperm.xlu0 %1980, %v506_v12  }
  0x33   : > { %431 = vperm.xlu1 %1981, %v377_v13  }
  0x34   : > { %426 = vperm.xlu0 %1980, %v376_v14  }
  0x37   : > { %559 = vperm.xlu1 %1981, %v505_v15   ;;  %v362_v15 = vld [vmem:[%s2460_s17 + $0xd0] sm:$0xff] }
  0x38   : > { %554 = vperm.xlu0 %1980, %v504_v16   ;;  %v363_v16 = vld [vmem:[%s2460_s17 + $0xd8] sm:$0xff] }
  0x3b   : > { %421 = vperm.xlu1 %1981, %v375_v17  }
  0x3c   : > { %416 = vperm.xlu0 %1980, %v374_v18  }
  0x3f   : > { %549 = vperm.xlu1 %1981, %v503_v19  }
  0x40   : > { %544 = vperm.xlu0 %1980, %v502_v20  }
  0x43   : > { %411 = vperm.xlu1 %1981, %v373_v21  }
  0x44   : > { %406 = vperm.xlu0 %1980, %v372_v22   ;;  %v360_v22 = vld [vmem:[%s2460_s17 + $0xc0] sm:$0xff] }
  0x47   : > { %539 = vperm.xlu1 %1981, %v501_v23   ;;  %v361_v23 = vld [vmem:[%s2460_s17 + $0xc8] sm:$0xff] }
  0x48   : > { %534 = vperm.xlu0 %1980, %v500_v24  }
  0x4b   : > { %401 = vperm.xlu1 %1981, %v371_v25  }
  0x4c   : > { %396 = vperm.xlu0 %1980, %v370_v26  }
  0x4f   : > { %529 = vperm.xlu1 %1981, %v499_v27  }
  0x50   : > { %524 = vperm.xlu0 %1980, %v498_v28  }
  0x53   : > { %391 = vperm.xlu1 %1981, %v369_v29  }
  0x54   : > { %386 = vperm.xlu0 %1980, %v368_v30  }
  0x57   : > { %519 = vperm.xlu1 %1981, %v497_v31  }
  0x58   : > { %514 = vperm.xlu0 %1980, %v496_v32  }
  0x5b   : > { %711 = vperm.xlu1 %1981, %v673_v33  }
  0x5c   : > { %706 = vperm.xlu0 %1980, %v672_v34  }
  0x5f   : > { %721 = vperm.xlu1 %1981, %v675_v35  }
  0x60   : > { %716 = vperm.xlu0 %1980, %v674_v36  }
  0x63   : > { %731 = vperm.xlu1 %1981, %v677_v37  }
  0x64   : > { %726 = vperm.xlu0 %1980, %v676_v38  }
  0x67   : > { %741 = vperm.xlu1 %1981, %v679_v39   ;;  %v358_v39 = vld [vmem:[%s2460_s17 + $0xb0] sm:$0xff] }
  0x68   : > { %736 = vperm.xlu0 %1980, %v678_v40   ;;  %v359_v40 = vld [vmem:[%s2460_s17 + $0xb8] sm:$0xff] }
  0x6b   : > { %751 = vperm.xlu1 %1981, %v681_v41  }
  0x6c   : > { %746 = vperm.xlu0 %1980, %v680_v42   ;;  %v356_v42 = vld [vmem:[%s2460_s17 + $0xa0] sm:$0xff] }
  0x6f   : > { %786 = vperm.xlu1 %1981, %v688_v43   ;;  %v357_v43 = vld [vmem:[%s2460_s17 + $0xa8] sm:$0xff] }
  0x70   : > { %756 = vperm.xlu0 %1980, %v682_v44  }
  0x73   : > { %796 = vperm.xlu1 %1981, %v690_v45  }
  0x74   : > { %791 = vperm.xlu0 %1980, %v689_v46  }
  0x77   : > { %806 = vperm.xlu1 %1981, %v692_v47  }
  0x78   : > { %801 = vperm.xlu0 %1980, %v691_v48  }
  0x7b   : > { %816 = vperm.xlu1 %1981, %v694_v49  }
  0x7c   : > { %811 = vperm.xlu0 %1980, %v693_v50  }
  0x7f   : > { %826 = vperm.xlu1 %1981, %v696_v51  }
  0x80   : > { %821 = vperm.xlu0 %1980, %v695_v52  }
  0x83   : > { %836 = vperm.xlu1 %1981, %v698_v53  }
  0x84   : > { %831 = vperm.xlu0 %1980, %v697_v54  }
  0x87   : > { %846 = vperm.xlu1 %1981, %v700_v55  }
  0x88   : > { %841 = vperm.xlu0 %1980, %v699_v56  }
  0x8b   : > { %856 = vperm.xlu1 %1981, %v702_v57   ;;  %v354_v57 = vld [vmem:[%s2460_s17 + $0x90] sm:$0xff] }
  0x8c   : > { %851 = vperm.xlu0 %1980, %v701_v58   ;;  %v355_v58 = vld [vmem:[%s2460_s17 + $0x98] sm:$0xff] }
  0x8f   : > { %761 = vperm.xlu1 %1981, %v683_v59  }
  0x90   : > { %861 = vperm.xlu0 %1980, %v703_v60   ;;  %v352_v60 = vld [vmem:[%s2460_s17 + $0x80] sm:$0xff] }
  0x93   : > { %771 = vperm.xlu1 %1981, %v685_v61   ;;  %v353_v61 = vld [vmem:[%s2460_s17 + $0x88] sm:$0xff] }
  0x94   : > { %766 = vperm.xlu0 %1980, %v684_v62  }
  0x96   : > { %v585_v2 = vpop.permute.xlu1 %584 }
  0x97   : > { %v457_v3 = vpop.permute.xlu0 %456  ;;  %781 = vperm.xlu1 %1981, %v687_v63  }
  0x98   : > { %776 = vperm.xlu0 %1980, %v686_v1   ;;  %v492_v8 = vmul.f32 %v457_v3, %v364_v4  ;;  %v493_v9 = vmul.f32 %v457_v3, %v365_v5 }
  0x9a   : > { %v590_v10 = vpop.permute.xlu1 %589  ;;  %v621_v17 = vadd.f32 %v585_v2, %v493_v9  ;;  %v620_v19 = vadd.f32 %v585_v2, %v492_v8 }
  0x9b   : > { %v462_v11 = vpop.permute.xlu0 %461 }
  0x9c   : > { %v494_v12 = vmul.f32 %v462_v11, %v366_v6  ;;  %v495_v13 = vmul.f32 %v462_v11, %v367_v7 }
  0x9e   : > { %v452_v14 = vpop.permute.xlu1 %451  ;;  %v623_v18 = vadd.f32 %v590_v10, %v495_v13  ;;  %v622_v20 = vadd.f32 %v590_v10, %v494_v12  ;;  %v350_v12 = vld [vmem:[%s2460_s17 + $0x70] sm:$0xff]  ;;  %v351_v13 = vld [vmem:[%s2460_s17 + $0x78] sm:$0xff] }
  0x9f   : > { %v447_v21 = vpop.permute.xlu0 %446  ;;  %v490_v26 = vmul.f32 %v452_v14, %v362_v15  ;;  %v491_v27 = vmul.f32 %v452_v14, %v363_v16  ;;  %v348_v15 = vld [vmem:[%s2460_s17 + $0x60] sm:$0xff]  ;;  %v349_v16 = vld [vmem:[%s2460_s17 + $0x68] sm:$0xff] }
  0xa0   : > { %v639_v24 = vpack.c.bf16 %v623_v18, %v621_v17  ;;  %v638_v25 = vpack.c.bf16 %v622_v20, %v620_v19  ;;  %v488_v28 = vmul.f32 %v447_v21, %v360_v22  ;;  %v489_v29 = vmul.f32 %v447_v21, %v361_v23 }
  0xa2   : > { %960 = vmatprep.subr.bf16.mxu0 %v639_v24  ;;  %1899 = vmatprep.subr.bf16.mxu1 %v639_v24  ;;  %v580_v30 = vpop.permute.xlu1 %579 }
  0xa3   : > { %v618_v31 = vadd.f32 %v580_v30, %v490_v26  ;;  %v619_v32 = vadd.f32 %v580_v30, %v491_v27  ;;  %v575_v33 = vpop.permute.xlu0 %574  ;;  %961 = vmatpush1.bf16.msra.mxu0 %v638_v25  ;;  %1907 = vmatpush1.bf16.msra.mxu1 %v638_v25  ;;  %v346_v30 = vld [vmem:[%s2460_s17 + $0x50] sm:$0xff] }
  0xa4   : > { %v616_v34 = vadd.f32 %v575_v33, %v488_v28  ;;  %v617_v35 = vadd.f32 %v575_v33, %v489_v29  ;;  %v344_v33 = vld [vmem:[%s2460_s17 + $0x40] sm:$0xff] }
  0xa6   : > { %v636_v36 = vpack.c.bf16 %v618_v31, %v616_v34  ;;  %v637_v37 = vpack.c.bf16 %v619_v32, %v617_v35  ;;  %v442_v38 = vpop.permute.xlu1 %441  ;;  %v347_v31 = vld [vmem:[%s2460_s17 + $0x58] sm:$0xff]  ;;  %v345_v34 = vld [vmem:[%s2460_s17 + $0x48] sm:$0xff] }
  0xa7   : > { %v437_v41 = vpop.permute.xlu0 %436  ;;  %v486_v44 = vmul.f32 %v442_v38, %v358_v39  ;;  %v487_v45 = vmul.f32 %v442_v38, %v359_v40 }
  0xa8   : > { %962 = vmatprep.subr.bf16.mxu0 %v637_v37  ;;  %1900 = vmatprep.subr.bf16.mxu1 %v637_v37  ;;  %v484_v46 = vmul.f32 %v437_v41, %v356_v42  ;;  %v485_v47 = vmul.f32 %v437_v41, %v357_v43 }
  0xa9   : > { %963 = vmatpush1.bf16.msra.mxu0 %v636_v36  ;;  %1908 = vmatpush1.bf16.msra.mxu1 %v636_v36 }
  0xaa   : > { %v570_v48 = vpop.permute.xlu1 %569 }
  0xab   : > { %v614_v49 = vadd.f32 %v570_v48, %v486_v44  ;;  %v615_v50 = vadd.f32 %v570_v48, %v487_v45  ;;  %v565_v51 = vpop.permute.xlu0 %564  ;;  %v342_v48 = vld [vmem:[%s2460_s17 + $0x30] sm:$0xff] }
  0xac   : > { %v612_v52 = vadd.f32 %v565_v51, %v484_v46  ;;  %v613_v53 = vadd.f32 %v565_v51, %v485_v47  ;;  %v340_v51 = vld [vmem:[%s2460_s17 + $0x20] sm:$0xff] }
  0xae   : > { %v634_v54 = vpack.c.bf16 %v614_v49, %v612_v52  ;;  %v635_v55 = vpack.c.bf16 %v615_v50, %v613_v53  ;;  %v432_v56 = vpop.permute.xlu1 %431  ;;  %v343_v49 = vld [vmem:[%s2460_s17 + $0x38] sm:$0xff]  ;;  %v341_v52 = vld [vmem:[%s2460_s17 + $0x28] sm:$0xff] }
  0xaf   : > { %v427_v59 = vpop.permute.xlu0 %426  ;;  %v482_v62 = vmul.f32 %v432_v56, %v354_v57  ;;  %v483_v63 = vmul.f32 %v432_v56, %v355_v58 }
  0xb0   : > { %964 = vmatprep.subr.bf16.mxu0 %v635_v55  ;;  %1901 = vmatprep.subr.bf16.mxu1 %v635_v55  ;;  %v480_v1 = vmul.f32 %v427_v59, %v352_v60  ;;  %v481_v2 = vmul.f32 %v427_v59, %v353_v61 }
  0xb1   : > { %965 = vmatpush1.bf16.msra.mxu0 %v634_v54  ;;  %1909 = vmatpush1.bf16.msra.mxu1 %v634_v54 }
  0xb2   : > { %v560_v3 = vpop.permute.xlu1 %559 }
  0xb3   : > { %v610_v4 = vadd.f32 %v560_v3, %v482_v62  ;;  %v611_v5 = vadd.f32 %v560_v3, %v483_v63  ;;  %v555_v6 = vpop.permute.xlu0 %554  ;;  %v338_v3 = vld [vmem:[%s2460_s17 + $0x10] sm:$0xff] }
  0xb4   : > { %v608_v7 = vadd.f32 %v555_v6, %v480_v1  ;;  %v609_v8 = vadd.f32 %v555_v6, %v481_v2  ;;  %v336_v6 = vld [vmem:[%s2460_s17] sm:$0xff] }
  0xb6   : > { %v632_v9 = vpack.c.bf16 %v610_v4, %v608_v7  ;;  %v633_v10 = vpack.c.bf16 %v611_v5, %v609_v8  ;;  %v422_v11 = vpop.permute.xlu1 %421  ;;  %v339_v4 = vld [vmem:[%s2460_s17 + $0x18] sm:$0xff]  ;;  %v337_v7 = vld [vmem:[%s2460_s17 + $0x8] sm:$0xff] }
  0xb7   : > { %v417_v14 = vpop.permute.xlu0 %416  ;;  %v478_v17 = vmul.f32 %v422_v11, %v350_v12  ;;  %v479_v18 = vmul.f32 %v422_v11, %v351_v13 }
  0xb8   : > { %966 = vmatprep.subr.bf16.mxu0 %v633_v10  ;;  %1902 = vmatprep.subr.bf16.mxu1 %v633_v10  ;;  %v476_v19 = vmul.f32 %v417_v14, %v348_v15  ;;  %v477_v20 = vmul.f32 %v417_v14, %v349_v16 }
  0xb9   : > { %967 = vmatpush1.bf16.msra.mxu0 %v632_v9  ;;  %1910 = vmatpush1.bf16.msra.mxu1 %v632_v9 }
  0xba   : > { %v550_v21 = vpop.permute.xlu1 %549 }
  0xbb   : > { %v606_v22 = vadd.f32 %v550_v21, %v478_v17  ;;  %v607_v23 = vadd.f32 %v550_v21, %v479_v18  ;;  %v545_v24 = vpop.permute.xlu0 %544  ;;  %v2095_v21 = vld [vmem:[%s2734_s3 + $0x40] sm:$0xff]  }
  0xbc   : > { %v604_v25 = vadd.f32 %v545_v24, %v476_v19  ;;  %v605_v26 = vadd.f32 %v545_v24, %v477_v20  ;;  %v2094_v20 = vld [vmem:[%s2734_s3] sm:$0xff]   ;;  %v2098_v24 = vld [vmem:[%s2734_s3 + $0x10] sm:$0xff]  }
  0xbe   : > { %v630_v27 = vpack.c.bf16 %v606_v22, %v604_v25  ;;  %v631_v28 = vpack.c.bf16 %v607_v23, %v605_v26  ;;  %v412_v29 = vpop.permute.xlu1 %411  ;;  %v2096_v22 = vld [vmem:[%s2734_s3 + $0x8] sm:$0xff]   ;;  %v2099_v25 = vld [vmem:[%s2734_s3 + $0x50] sm:$0xff]   ;;  %v2100_v26 = vld [vmem:[%s2734_s3 + $0x18] sm:$0xff]  }
  0xbf   : > { %v407_v32 = vpop.permute.xlu0 %406  ;;  %v474_v35 = vmul.f32 %v412_v29, %v346_v30  ;;  %v475_v36 = vmul.f32 %v412_v29, %v347_v31  ;;  %v2097_v23 = vld [vmem:[%s2734_s3 + $0x48] sm:$0xff]   ;;  %v2103_v29 = vld [vmem:[%s2734_s3 + $0x60] sm:$0xff]  }
  0xc0   : > { %968 = vmatprep.subr.bf16.mxu0 %v631_v28  ;;  %1903 = vmatprep.subr.bf16.mxu1 %v631_v28  ;;  %v472_v37 = vmul.f32 %v407_v32, %v344_v33  ;;  %v473_v38 = vmul.f32 %v407_v32, %v345_v34  ;;  %v2102_v28 = vld [vmem:[%s2734_s3 + $0x20] sm:$0xff]   ;;  %v2104_v30 = vld [vmem:[%s2734_s3 + $0x28] sm:$0xff]   ;;  %v2106_v32 = vld [vmem:[%s2734_s3 + $0x30] sm:$0xff]  }
  0xc1   : > { %969 = vmatpush1.bf16.msra.mxu0 %v630_v27  ;;  %1911 = vmatpush1.bf16.msra.mxu1 %v630_v27  ;;  %v2101_v27 = vld [vmem:[%s2734_s3 + $0x58] sm:$0xff]   ;;  %v2105_v31 = vld [vmem:[%s2734_s3 + $0x68] sm:$0xff]   ;;  %v2107_v33 = vld [vmem:[%s2734_s3 + $0x70] sm:$0xff]  }
  0xc2   : > { %v540_v39 = vpop.permute.xlu1 %539  ;;  %v2108_v34 = vld [vmem:[%s2734_s3 + $0x38] sm:$0xff]  }
  0xc3   : > { %v602_v40 = vadd.f32 %v540_v39, %v474_v35  ;;  %v603_v41 = vadd.f32 %v540_v39, %v475_v36  ;;  %v535_v42 = vpop.permute.xlu0 %534  ;;  %v2109_v35 = vld [vmem:[%s2734_s3 + $0x78] sm:$0xff]  }
  0xc4   : > { %v600_v43 = vadd.f32 %v535_v42, %v472_v37  ;;  %v601_v44 = vadd.f32 %v535_v42, %v473_v38 }
  0xc6   : > { %v628_v45 = vpack.c.bf16 %v602_v40, %v600_v43  ;;  %v629_v46 = vpack.c.bf16 %v603_v41, %v601_v44  ;;  %v402_v47 = vpop.permute.xlu1 %401 }
  0xc7   : > { %v397_v50 = vpop.permute.xlu0 %396  ;;  %v470_v53 = vmul.f32 %v402_v47, %v342_v48  ;;  %v471_v54 = vmul.f32 %v402_v47, %v343_v49 }
  0xc8   : > { %970 = vmatprep.subr.bf16.mxu0 %v629_v46  ;;  %1904 = vmatprep.subr.bf16.mxu1 %v629_v46  ;;  %v468_v55 = vmul.f32 %v397_v50, %v340_v51  ;;  %v469_v56 = vmul.f32 %v397_v50, %v341_v52 }
  0xc9   : > { %971 = vmatpush1.bf16.msra.mxu0 %v628_v45  ;;  %1912 = vmatpush1.bf16.msra.mxu1 %v628_v45 }
  0xca   : > { %v530_v57 = vpop.permute.xlu1 %529 }
  0xcb   : > { %v598_v58 = vadd.f32 %v530_v57, %v470_v53  ;;  %v599_v59 = vadd.f32 %v530_v57, %v471_v54  ;;  %v525_v60 = vpop.permute.xlu0 %524 }
  0xcc   : > { %v596_v61 = vadd.f32 %v525_v60, %v468_v55  ;;  %v597_v62 = vadd.f32 %v525_v60, %v469_v56 }
  0xce   : > { %v626_v63 = vpack.c.bf16 %v598_v58, %v596_v61  ;;  %v627_v1 = vpack.c.bf16 %v599_v59, %v597_v62  ;;  %v392_v2 = vpop.permute.xlu1 %391 }
  0xcf   : > { %v387_v5 = vpop.permute.xlu0 %386  ;;  %v466_v8 = vmul.f32 %v392_v2, %v338_v3  ;;  %v467_v9 = vmul.f32 %v392_v2, %v339_v4 }
  0xd0   : > { %972 = vmatprep.subr.bf16.mxu0 %v627_v1  ;;  %1905 = vmatprep.subr.bf16.mxu1 %v627_v1  ;;  %v464_v10 = vmul.f32 %v387_v5, %v336_v6  ;;  %v465_v11 = vmul.f32 %v387_v5, %v337_v7 }
  0xd1   : > { %973 = vmatpush1.bf16.msra.mxu0 %v626_v63  ;;  %1913 = vmatpush1.bf16.msra.mxu1 %v626_v63 }
  0xd2   : > { %v520_v12 = vpop.permute.xlu1 %519 }
  0xd3   : > { %v594_v13 = vadd.f32 %v520_v12, %v466_v8  ;;  %v595_v14 = vadd.f32 %v520_v12, %v467_v9  ;;  %v515_v15 = vpop.permute.xlu0 %514 }
  0xd4   : > { %v592_v16 = vadd.f32 %v515_v15, %v464_v10  ;;  %v593_v17 = vadd.f32 %v515_v15, %v465_v11 }
  0xd6   : > { %v624_v18 = vpack.c.bf16 %v594_v13, %v592_v16  ;;  %v625_v19 = vpack.c.bf16 %v595_v14, %v593_v17  ;;  %v712_v37 = vpop.permute.xlu1 %711 }
  0xd7   : > { %v707_v36 = vpop.permute.xlu0 %706 }
  0xd8   : > { %974 = vmatprep.subr.bf16.mxu0 %v625_v19  ;;  %1906 = vmatprep.subr.bf16.mxu1 %v625_v19 }
  0xd9   : > { %975 = vmatpush1.bf16.msra.mxu0 %v624_v18  ;;  %1914 = vmatpush1.bf16.msra.mxu1 %v624_v18 }
  0xda   : > { %v722_v39 = vpop.permute.xlu1 %721 }
  0xdb   : > { %v717_v38 = vpop.permute.xlu0 %716 }
  0xdc   : > { %993 = vmatmul.mubr.bf16.vlgmr.msra.gmra.mxu0 %v2094_v20  ;;  %1073 = vmatmul.mubr.bf16.vlgmr.msra.gmra.mxu1 %v2095_v21 }
  0xdd   : > { %1002 = vmatprep.mubr.bf16.mxu0 %v2218_v0  ;;  %1082 = vmatprep.mubr.bf16.mxu1 %v2218_v0 }
  0xde   : > { %v2564_v41 = vpop.permute.xlu1 %731 }
  0xdf   : > { %v2562_v40 = vpop.permute.xlu0 %726 }
  0xe2   : > { %v2568_v42 = vpop.permute.xlu1 %741 }
  0xe4   : > { %1003 = vmatmul.mubr.bf16.gmra.mxu0 %v2096_v22  ;;  %1083 = vmatmul.mubr.bf16.gmra.mxu1 %v2097_v23 }
  0xe5   : > { %1012 = vmatprep.mubr.bf16.mxu0 %v2218_v0  ;;  %1092 = vmatprep.mubr.bf16.mxu1 %v2218_v0 }
  0xe6   : > { %v2572_v44 = vpop.permute.xlu1 %751 }
  0xea   : > { %v787_v46 = vpop.permute.xlu1 %786 }
  0xec   : > { %1013 = vmatmul.mubr.bf16.gmra.mxu0 %v2098_v24  ;;  %1093 = vmatmul.mubr.bf16.gmra.mxu1 %v2099_v25 }
  0xed   : > { %1022 = vmatprep.mubr.bf16.mxu0 %v2218_v0  ;;  %1102 = vmatprep.mubr.bf16.mxu1 %v2218_v0 }
  0xee   : > { %v797_v52 = vpop.permute.xlu1 %796 }
  0xf2   : > { %v807_v7 = vpop.permute.xlu1 %806 }
  0xf4   : > { %1023 = vmatmul.mubr.bf16.gmra.mxu0 %v2100_v26  ;;  %1103 = vmatmul.mubr.bf16.gmra.mxu1 %v2101_v27 }
  0xf5   : > { %1032 = vmatprep.mubr.bf16.mxu0 %v2218_v0  ;;  %1112 = vmatprep.mubr.bf16.mxu1 %v2218_v0 }
  0xf6   : > { %v817_v23 = vpop.permute.xlu1 %816 }
  0xfc   : > { %1033 = vmatmul.mubr.bf16.gmra.mxu0 %v2102_v28  ;;  %1113 = vmatmul.mubr.bf16.gmra.mxu1 %v2103_v29 }
  0xfd   : > { %1042 = vmatprep.mubr.bf16.mxu0 %v2218_v0  ;;  %1122 = vmatprep.mubr.bf16.mxu1 %v2218_v0 }
 0x104   : > { %1043 = vmatmul.mubr.bf16.gmra.mxu0 %v2104_v30  ;;  %1123 = vmatmul.mubr.bf16.gmra.mxu1 %v2105_v31 }
 0x105   : > { %1052 = vmatprep.mubr.bf16.mxu0 %v2218_v0  ;;  %1132 = vmatprep.mubr.bf16.mxu1 %v2218_v0 }
 0x10c   : > { %1053 = vmatmul.mubr.bf16.gmra.mxu0 %v2106_v32  ;;  %1133 = vmatmul.mubr.bf16.gmra.mxu1 %v2107_v33 }
 0x10d   : > { %1062 = vmatprep.mubr.bf16.mxu0 %v2218_v0  ;;  %1142 = vmatprep.mubr.bf16.mxu1 %v2218_v0  ;;  %v2566_v0 = vpop.permute.xlu0 %736 }
 0x111   : > { %v2570_v43 = vpop.permute.xlu0 %746 }
 0x114   : > { %1063 = vmatmul.mubr.bf16.gmra.mxu0 %v2108_v34  ;;  %1143 = vmatmul.mubr.bf16.gmra.mxu1 %v2109_v35 }
 0x115   : > { %v2574_v45 = vpop.permute.xlu0 %756 }
 0x119   : > { %v792_v49 = vpop.permute.xlu0 %791 }
 0x11d   : > { %v802_v63 = vpop.permute.xlu0 %801 }
 0x121   : > { %v812_v18 = vpop.permute.xlu0 %811 }
 0x125   : > { %v822_v34 = vpop.permute.xlu0 %821 }
 0x19c   : > { %v994_v47 = vpop.f32.mrf.mxu0  ;;  %v1074_v48 = vpop.f32.mrf.mxu1 }
 0x19d   : > { %v995_v53 = vadd.f32 %v994_v47, %v707_v36  ;;  %v1075_v54 = vadd.f32 %v1074_v48, %v787_v46  ;;  %v827_v47 = vpop.permute.xlu1 %826 }
 0x19e   : > { %v996_v50 = vpop.f32.mrf.mxu0  ;;  %v1076_v51 = vpop.f32.mrf.mxu1 }
 0x19f   : > { %v997_v55 = vadd.f32 %v996_v50, %v707_v36  ;;  %v1077_v56 = vadd.f32 %v1076_v51, %v787_v46 }
 0x1a0   : > { %v998_v57 = vpop.f32.mrf.mxu0  ;;  %v1078_v58 = vpop.f32.mrf.mxu1 }
 0x1a1   : > { %v1754_v59 = vpack.c.bf16 %v997_v55, %v995_v53  ;;  %v1982_v60 = vpack.i.bf16 %v1077_v56, %v1075_v54  ;;  %v999_v1 = vadd.f32 %v998_v57, %v712_v37  ;;  %v1079_v2 = vadd.f32 %v1078_v58, %v792_v49  ;;  %v832_v57 = vpop.permute.xlu0 %831 }
 0x1a2   : > { %v1000_v61 = vpop.f32.mrf.mxu0  ;;  %v1080_v62 = vpop.f32.mrf.mxu1 }
 0x1a3   : > { %1249 = vst [vmem:[%s2582_s14] sm:$0xff] %v1754_v59  ;;  %v1001_v3 = vadd.f32 %v1000_v61, %v712_v37  ;;  %v1081_v4 = vadd.f32 %v1080_v62, %v792_v49  ;;  %1983 = vxpose.xlu0.b32.start [1/16] %v1982_v60, 128  ;;  %v837_v62 = vpop.permute.xlu1 %836 }
 0x1a4   : > { %v1004_v5 = vpop.f32.mrf.mxu0  ;;  %v1084_v6 = vpop.f32.mrf.mxu1 }
 0x1a5   : > { %v1755_v8 = vpack.c.bf16 %v1001_v3, %v999_v1  ;;  %v1984_v9 = vpack.i.bf16 %v1081_v4, %v1079_v2  ;;  %v1005_v12 = vadd.f32 %v1004_v5, %v717_v38  ;;  %v1085_v13 = vadd.f32 %v1084_v6, %v797_v52 }
 0x1a6   : > { %v1006_v10 = vpop.f32.mrf.mxu0  ;;  %v1086_v11 = vpop.f32.mrf.mxu1 }
 0x1a7   : > { %1250 = vst [vmem:[%s2582_s14 + $0x8] sm:$0xff] %v1755_v8  ;;  %v1007_v14 = vadd.f32 %v1006_v10, %v717_v38  ;;  %v1087_v15 = vadd.f32 %v1086_v11, %v797_v52  ;;  %1985 = vxpose.xlu0.b32.cont [2/16] %v1984_v9, 128  ;;  %v842_v9 = vpop.permute.xlu0 %841 }
 0x1a8   : > { %v1008_v16 = vpop.f32.mrf.mxu0  ;;  %v1088_v17 = vpop.f32.mrf.mxu1 }
 0x1a9   : > { %v1756_v19 = vpack.c.bf16 %v1007_v14, %v1005_v12  ;;  %v1986_v20 = vpack.i.bf16 %v1087_v15, %v1085_v13  ;;  %v1009_v24 = vadd.f32 %v1008_v16, %v722_v39  ;;  %v1089_v25 = vadd.f32 %v1088_v17, %v802_v63  ;;  %v847_v15 = vpop.permute.xlu1 %846 }
 0x1aa   : > { %v1010_v21 = vpop.f32.mrf.mxu0  ;;  %v1090_v22 = vpop.f32.mrf.mxu1 }
 0x1ab   : > { %1251 = vst [vmem:[%s2582_s14 + $0x10] sm:$0xff] %v1756_v19  ;;  %v1011_v26 = vadd.f32 %v1010_v21, %v722_v39  ;;  %v1091_v27 = vadd.f32 %v1090_v22, %v802_v63  ;;  %1987 = vxpose.xlu0.b32.cont [3/16] %v1986_v20, 128 }
 0x1ac   : > { %v1014_v28 = vpop.f32.mrf.mxu0  ;;  %v1094_v29 = vpop.f32.mrf.mxu1 }
 0x1ad   : > { %v1757_v30 = vpack.c.bf16 %v1011_v26, %v1009_v24  ;;  %v1988_v31 = vpack.i.bf16 %v1091_v27, %v1089_v25  ;;  %v1015_v35 = vadd.f32 %v1014_v28, %v2562_v40  ;;  %v1095_v36 = vadd.f32 %v1094_v29, %v807_v7  ;;  %v852_v25 = vpop.permute.xlu0 %851 }
 0x1ae   : > { %v1016_v32 = vpop.f32.mrf.mxu0  ;;  %v1096_v33 = vpop.f32.mrf.mxu1 }
 0x1af   : > { %1252 = vst [vmem:[%s2582_s14 + $0x18] sm:$0xff] %v1757_v30  ;;  %v1017_v37 = vadd.f32 %v1016_v32, %v2562_v40  ;;  %v1097_v38 = vadd.f32 %v1096_v33, %v807_v7  ;;  %1989 = vxpose.xlu0.b32.cont [4/16] %v1988_v31, 128  ;;  %v2602_v30 = vpop.permute.xlu1 %856 }
 0x1b0   : > { %v1018_v46 = vpop.f32.mrf.mxu0  ;;  %v1098_v39 = vpop.f32.mrf.mxu1 }
 0x1b1   : > { %v1758_v48 = vpack.c.bf16 %v1017_v37, %v1015_v35  ;;  %v1990_v49 = vpack.i.bf16 %v1097_v38, %v1095_v36  ;;  %v1019_v52 = vadd.f32 %v1018_v46, %v2564_v41  ;;  %v1099_v53 = vadd.f32 %v1098_v39, %v812_v18  ;;  %v2607_v39 = vpop.permute.xlu0 %861 }
 0x1b2   : > { %v1020_v50 = vpop.f32.mrf.mxu0  ;;  %v1100_v51 = vpop.f32.mrf.mxu1 }
 0x1b3   : > { %1253 = vst [vmem:[%s2582_s14 + $0x20] sm:$0xff] %v1758_v48  ;;  %v1021_v54 = vadd.f32 %v1020_v50, %v2564_v41  ;;  %v1101_v55 = vadd.f32 %v1100_v51, %v812_v18  ;;  %1991 = vxpose.xlu0.b32.cont [5/16] %v1990_v49, 128 }
 0x1b4   : > { %v1024_v56 = vpop.f32.mrf.mxu0  ;;  %v1104_v40 = vpop.f32.mrf.mxu1 }
 0x1b5   : > { %v1759_v58 = vpack.c.bf16 %v1021_v54, %v1019_v52  ;;  %v1992_v59 = vpack.i.bf16 %v1101_v55, %v1099_v53  ;;  %v1025_v63 = vadd.f32 %v1024_v56, %v2566_v0  ;;  %v1105_v1 = vadd.f32 %v1104_v40, %v817_v23  ;;  %v762_v52 = vpop.permute.xlu1 %761 }
 0x1b6   : > { %v1026_v60 = vpop.f32.mrf.mxu0  ;;  %v1106_v61 = vpop.f32.mrf.mxu1 }
 0x1b7   : > { %1254 = vst [vmem:[%s2582_s14 + $0x28] sm:$0xff] %v1759_v58  ;;  %v1027_v2 = vadd.f32 %v1026_v60, %v2566_v0  ;;  %v1107_v3 = vadd.f32 %v1106_v61, %v817_v23  ;;  %1993 = vxpose.xlu0.b32.cont [6/16] %v1992_v59, 128 }
 0x1b8   : > { %v1028_v41 = vpop.f32.mrf.mxu0  ;;  %v1108_v4 = vpop.f32.mrf.mxu1 }
 0x1b9   : > { %v1760_v5 = vpack.c.bf16 %v1027_v2, %v1025_v63  ;;  %v1994_v6 = vpack.i.bf16 %v1107_v3, %v1105_v1  ;;  %v1029_v10 = vadd.f32 %v1028_v41, %v2568_v42  ;;  %v1109_v11 = vadd.f32 %v1108_v4, %v822_v34  ;;  %v767_v63 = vpop.permute.xlu0 %766 }
 0x1ba   : > { %v1030_v7 = vpop.f32.mrf.mxu0  ;;  %v1110_v8 = vpop.f32.mrf.mxu1 }
 0x1bb   : > { %1255 = vst [vmem:[%s2582_s14 + $0x30] sm:$0xff] %v1760_v5  ;;  %v1031_v12 = vadd.f32 %v1030_v7, %v2568_v42  ;;  %v1111_v13 = vadd.f32 %v1110_v8, %v822_v34  ;;  %1995 = vxpose.xlu0.b32.cont [7/16] %v1994_v6, 128  ;;  %v772_v8 = vpop.permute.xlu1 %771 }
 0x1bc   : > { %v1034_v14 = vpop.f32.mrf.mxu0  ;;  %v1114_v0 = vpop.f32.mrf.mxu1 }
 0x1bd   : > { %v1761_v16 = vpack.c.bf16 %v1031_v12, %v1029_v10  ;;  %v1996_v17 = vpack.i.bf16 %v1111_v13, %v1109_v11  ;;  %v1035_v20 = vadd.f32 %v1034_v14, %v2570_v43  ;;  %v1115_v21 = vadd.f32 %v1114_v0, %v827_v47 }
 0x1be   : > { %v1036_v18 = vpop.f32.mrf.mxu0  ;;  %v1116_v19 = vpop.f32.mrf.mxu1 }
 0x1bf   : > { %1256 = vst [vmem:[%s2582_s14 + $0x38] sm:$0xff] %v1761_v16  ;;  %v1037_v22 = vadd.f32 %v1036_v18, %v2570_v43  ;;  %v1117_v23 = vadd.f32 %v1116_v19, %v827_v47  ;;  %1997 = vxpose.xlu0.b32.cont [8/16] %v1996_v17, 128  ;;  %v777_v19 = vpop.permute.xlu0 %776 }
 0x1c0   : > { %v1038_v24 = vpop.f32.mrf.mxu0  ;;  %v1118_v42 = vpop.f32.mrf.mxu1 }
 0x1c1   : > { %v1762_v26 = vpack.c.bf16 %v1037_v22, %v1035_v20  ;;  %v1998_v27 = vpack.i.bf16 %v1117_v23, %v1115_v21  ;;  %v1039_v31 = vadd.f32 %v1038_v24, %v2572_v44  ;;  %v1119_v32 = vadd.f32 %v1118_v42, %v832_v57 }
 0x1c2   : > { %v1040_v28 = vpop.f32.mrf.mxu0  ;;  %v1120_v29 = vpop.f32.mrf.mxu1 }
 0x1c3   : > { %1257 = vst [vmem:[%s2582_s14 + $0x40] sm:$0xff] %v1762_v26  ;;  %v1041_v33 = vadd.f32 %v1040_v28, %v2572_v44  ;;  %v1121_v34 = vadd.f32 %v1120_v29, %v832_v57  ;;  %1999 = vxpose.xlu0.b32.cont [9/16] %v1998_v27, 128  ;;  %v782_v28 = vpop.permute.xlu1 %781 }
 0x1c4   : > { %v1044_v43 = vpop.f32.mrf.mxu0  ;;  %v1124_v35 = vpop.f32.mrf.mxu1 }
 0x1c5   : > { %v1763_v36 = vpack.c.bf16 %v1041_v33, %v1039_v31  ;;  %v2000_v37 = vpack.i.bf16 %v1121_v34, %v1119_v32  ;;  %v1045_v47 = vadd.f32 %v1044_v43, %v2574_v45  ;;  %v1125_v48 = vadd.f32 %v1124_v35, %v837_v62 }
 0x1c6   : > { %v1046_v38 = vpop.f32.mrf.mxu0  ;;  %v1126_v46 = vpop.f32.mrf.mxu1 }
 0x1c7   : > { %1258 = vst [vmem:[%s2582_s14 + $0x48] sm:$0xff] %v1763_v36  ;;  %v1047_v49 = vadd.f32 %v1046_v38, %v2574_v45  ;;  %v1127_v50 = vadd.f32 %v1126_v46, %v837_v62  ;;  %2001 = vxpose.xlu0.b32.cont [10/16] %v2000_v37, 128 }
 0x1c8   : > { %v1048_v44 = vpop.f32.mrf.mxu0  ;;  %v1128_v51 = vpop.f32.mrf.mxu1 }
 0x1c9   : > { %v1764_v53 = vpack.c.bf16 %v1047_v49, %v1045_v47  ;;  %v2002_v54 = vpack.i.bf16 %v1127_v50, %v1125_v48  ;;  %v1049_v40 = vadd.f32 %v1048_v44, %v762_v52  ;;  %v1129_v57 = vadd.f32 %v1128_v51, %v842_v9 }
 0x1ca   : > { %v1050_v55 = vpop.f32.mrf.mxu0  ;;  %v1130_v56 = vpop.f32.mrf.mxu1 }
 0x1cb   : > { %1259 = vst [vmem:[%s2582_s14 + $0x50] sm:$0xff] %v1764_v53  ;;  %v1051_v58 = vadd.f32 %v1050_v55, %v762_v52  ;;  %v1131_v59 = vadd.f32 %v1130_v56, %v842_v9  ;;  %2003 = vxpose.xlu0.b32.cont [11/16] %v2002_v54, 128 }
 0x1cc   : > { %v1054_v60 = vpop.f32.mrf.mxu0  ;;  %v1134_v61 = vpop.f32.mrf.mxu1 }
 0x1cd   : > { %v1765_v45 = vpack.c.bf16 %v1051_v58, %v1049_v40  ;;  %v2004_v62 = vpack.i.bf16 %v1131_v59, %v1129_v57  ;;  %v1055_v3 = vadd.f32 %v1054_v60, %v767_v63  ;;  %v1135_v41 = vadd.f32 %v1134_v61, %v847_v15 }
 0x1ce   : > { %v1056_v1 = vpop.f32.mrf.mxu0  ;;  %v1136_v2 = vpop.f32.mrf.mxu1 }
 0x1cf   : > { %1260 = vst [vmem:[%s2582_s14 + $0x58] sm:$0xff] %v1765_v45  ;;  %v1057_v4 = vadd.f32 %v1056_v1, %v767_v63  ;;  %v1137_v5 = vadd.f32 %v1136_v2, %v847_v15  ;;  %2005 = vxpose.xlu0.b32.cont [12/16] %v2004_v62, 128 }
 0x1d0   : > { %v1058_v6 = vpop.f32.mrf.mxu0  ;;  %v1138_v7 = vpop.f32.mrf.mxu1 }
 0x1d1   : > { %v1766_v10 = vpack.c.bf16 %v1057_v4, %v1055_v3  ;;  %v2006_v9 = vpack.i.bf16 %v1137_v5, %v1135_v41  ;;  %v1059_v13 = vadd.f32 %v1058_v6, %v772_v8  ;;  %v1139_v14 = vadd.f32 %v1138_v7, %v852_v25 }
 0x1d2   : > { %v1060_v11 = vpop.f32.mrf.mxu0  ;;  %v1140_v12 = vpop.f32.mrf.mxu1 }
 0x1d3   : > { %1261 = vst [vmem:[%s2582_s14 + $0x60] sm:$0xff] %v1766_v10  ;;  %v1061_v0 = vadd.f32 %v1060_v11, %v772_v8  ;;  %v1141_v16 = vadd.f32 %v1140_v12, %v852_v25  ;;  %2007 = vxpose.xlu0.b32.cont [13/16] %v2006_v9, 128 }
 0x1d4   : > { %v1064_v17 = vpop.f32.mrf.mxu0  ;;  %v1144_v18 = vpop.f32.mrf.mxu1 }
 0x1d5   : > { %v1767_v20 = vpack.c.bf16 %v1061_v0, %v1059_v13  ;;  %v2008_v15 = vpack.i.bf16 %v1141_v16, %v1139_v14  ;;  %v1065_v23 = vadd.f32 %v1064_v17, %v777_v19  ;;  %v1145_v24 = vadd.f32 %v1144_v18, %v2602_v30 }
 0x1d6   : > { %v1066_v21 = vpop.f32.mrf.mxu0  ;;  %v1146_v22 = vpop.f32.mrf.mxu1 }
 0x1d7   : > { %1262 = vst [vmem:[%s2582_s14 + $0x68] sm:$0xff] %v1767_v20  ;;  %v1067_v42 = vadd.f32 %v1066_v21, %v777_v19  ;;  %v1147_v26 = vadd.f32 %v1146_v22, %v2602_v30  ;;  %2009 = vxpose.xlu0.b32.cont [14/16] %v2008_v15, 128 }
 0x1d8   : > { %v1068_v27 = vpop.f32.mrf.mxu0  ;;  %v1148_v25 = vpop.f32.mrf.mxu1 }
 0x1d9   : > { %v1768_v29 = vpack.c.bf16 %v1067_v42, %v1065_v23  ;;  %v2010_v31 = vpack.i.bf16 %v1147_v26, %v1145_v24  ;;  %v1069_v34 = vadd.f32 %v1068_v27, %v782_v28  ;;  %v1149_v43 = vadd.f32 %v1148_v25, %v2607_v39 }
 0x1da   : > { %v1070_v32 = vpop.f32.mrf.mxu0  ;;  %v1150_v33 = vpop.f32.mrf.mxu1 }
 0x1db   : > { %1263 = vst [vmem:[%s2582_s14 + $0x70] sm:$0xff] %v1768_v29  ;;  %v1071_v35 = vadd.f32 %v1070_v32, %v782_v28  ;;  %v1151_v30 = vadd.f32 %v1150_v33, %v2607_v39  ;;  %2011 = vxpose.xlu0.b32.cont [15/16] %v2010_v31, 128 }
 0x1dd   : > { %v1769_v36 = vpack.c.bf16 %v1071_v35, %v1069_v34  ;;  %v2012_v37 = vpack.i.bf16 %v1151_v30, %v1149_v43 }
 0x1df   : > { %1264 = vst [vmem:[%s2582_s14 + $0x78] sm:$0xff] %v1769_v36  ;;  %2013 = vxpose.xlu0.b32.end [16/16] %v2012_v37, 128 }
 0x1e0   : > { %2123 = shalt.err (!%p2120_p5)
}
 0x1e1   : > { %s2124_s8 = scalar_lea.hbm %s2629_s19, 2048  ;;  %s2128_s18 = scalar_lea.hbm %s2736_s5, 4096 }
 0x1e2   : > { %p2125_p6 = scmp.ne.s32.totalorder %s2629_s19, %s2124_s8  ;;  %p2129_p10 = scmp.lt.s32.totalorder %s2629_s19, %s2736_s5 }
 0x1e3   : > { %p2130_p11 = scmp.lt.s32.totalorder %s2128_s18, %s2124_s8 }
 0x1e4   : > { %p2126_p7 = pnand %p2125_p6, %p2300_p4 }
 0x1e5   : > { %p2131_p12 = por %p2130_p11, %p2129_p10 }
 0x1e6   : > { %p2127_p9 = pneg %p2126_p7 }
 0x1e8   : > { %p2132_p13 = pnand %p2131_p12, %p2127_p9 }
 0x1ea   : > { %2135 = shalt.err (!%p2132_p13)
}
 0x1eb   : > { %s2220_s20 = smov 128   ;;  %s2221_s28 = smov 8  }
 0x1ec   : > { %1915 = dma.vmem_to_hbm [thread:$0]  (%p2300_p4), %s2631_s16, 2048, %s2629_s19, %s1490_s11, %s2220_s20, %s2220_s20, %s2221_s28  }
 0x1ed   : > { %s2658_s15 = scalar_lea.vmem [#allocation4], %s1671_s13  ;;  %s2741_s16 = sshll.u32 %s2208_s24, 11 }
 0x1ee   : > { %s1528_s13 = sshll.u32 %s2658_s15, 4  ;;  %s2680_s30 = scalar_lea.hbm %s2737_s6, %s2741_s16  ;;  %s2682_s13 = int_to_ptr.vmem [resolvable:$true] %s1528_s13 }
 0x1ef   : > { %s1495_s8 = scalar_lea.sflag [#allocation5], %s2577_s12  ;;  %s2136_s14 = scalar_lea.vmem %s2682_s13, 2048 }
 0x1f0   : > { %p2137_p0 = scmp.ne.s32.totalorder %s2682_s13, %s2136_s14  ;;  %s2222_s24 = smov [#allocation4]  }
 0x1f1   : > { %s2140_s17 = sshll.u32 %s2222_s24, 4  ;;  %s2141_s17 = int_to_ptr.vmem [resolvable:$false] %s2140_s17 }
 0x1f2   : > { %p2138_p1 = pnand %p2137_p0, %p2300_p4  ;;  %s2142_s18 = scalar_lea.vmem %s2141_s17, 4096 }
 0x1f3   : > { %p2143_p3 = scmp.lt.s32.totalorder %s2682_s13, %s2141_s17  ;;  %p2144_p5 = scmp.lt.s32.totalorder %s2142_s18, %s2136_s14 }
 0x1f4   : > { %p2139_p2 = pneg %p2138_p1 }
 0x1f5   : > { %p2145_p6 = por %p2144_p5, %p2143_p3 }
 0x1f7   : > { %p2146_p7 = pnand %p2145_p6, %p2139_p2 }
 0x21f   : > { %v2014_v38 = vpop.trf.xlu0 }
 0x220   : > { %v2018_v46 = vunpack.i.h.bf16 %v2014_v38  ;;  %v2015_v39 = vunpack.i.l.bf16 %v2014_v38 }
 0x223   : > { %v2019_v47 = vpop.trf.xlu0 }
 0x224   : > { %v2023_v48 = vunpack.i.h.bf16 %v2019_v47  ;;  %v2020_v49 = vunpack.i.l.bf16 %v2019_v47 }
 0x226   : > { %v1807_v50 = vpack.c.bf16 %v2020_v49, %v2015_v39  ;;  %v1847_v44 = vpack.c.bf16 %v2023_v48, %v2018_v46 }
 0x227   : > { %v2024_v51 = vpop.trf.xlu0 }
 0x228   : > { %1808 = vst [vmem:[%s2658_s15] sm:$0xff] %v1807_v50   ;;  %1891 = vst [vmem:[%s2658_s15 + $0x40] sm:$0xff] %v1847_v44   ;;  %v2028_v52 = vunpack.i.h.bf16 %v2024_v51  ;;  %v2025_v53 = vunpack.i.l.bf16 %v2024_v51 }
 0x22b   : > { %v2029_v54 = vpop.trf.xlu0 }
 0x22c   : > { %v2033_v55 = vunpack.i.h.bf16 %v2029_v54  ;;  %v2030_v56 = vunpack.i.l.bf16 %v2029_v54 }
 0x22e   : > { %v1812_v40 = vpack.c.bf16 %v2030_v56, %v2025_v53  ;;  %v1852_v57 = vpack.c.bf16 %v2033_v55, %v2028_v52 }
 0x22f   : > { %v2034_v58 = vpop.trf.xlu0 }
 0x230   : > { %1884 = vst [vmem:[%s2658_s15 + $0x8] sm:$0xff] %v1812_v40   ;;  %1892 = vst [vmem:[%s2658_s15 + $0x48] sm:$0xff] %v1852_v57   ;;  %v2038_v59 = vunpack.i.h.bf16 %v2034_v58  ;;  %v2035_v60 = vunpack.i.l.bf16 %v2034_v58 }
 0x233   : > { %v2039_v61 = vpop.trf.xlu0 }
 0x234   : > { %v2043_v63 = vunpack.i.h.bf16 %v2039_v61  ;;  %v2040_v45 = vunpack.i.l.bf16 %v2039_v61 }
 0x236   : > { %v1817_v62 = vpack.c.bf16 %v2040_v45, %v2035_v60  ;;  %v1857_v1 = vpack.c.bf16 %v2043_v63, %v2038_v59 }
 0x237   : > { %v2044_v2 = vpop.trf.xlu0 }
 0x238   : > { %1885 = vst [vmem:[%s2658_s15 + $0x10] sm:$0xff] %v1817_v62   ;;  %1893 = vst [vmem:[%s2658_s15 + $0x50] sm:$0xff] %v1857_v1   ;;  %v2048_v3 = vunpack.i.h.bf16 %v2044_v2  ;;  %v2045_v41 = vunpack.i.l.bf16 %v2044_v2 }
 0x23b   : > { %v2049_v4 = vpop.trf.xlu0 }
 0x23c   : > { %v2053_v5 = vunpack.i.h.bf16 %v2049_v4  ;;  %v2050_v6 = vunpack.i.l.bf16 %v2049_v4 }
 0x23e   : > { %v1822_v7 = vpack.c.bf16 %v2050_v6, %v2045_v41  ;;  %v1862_v8 = vpack.c.bf16 %v2053_v5, %v2048_v3 }
 0x23f   : > { %v2054_v10 = vpop.trf.xlu0 }
 0x240   : > { %1886 = vst [vmem:[%s2658_s15 + $0x18] sm:$0xff] %v1822_v7   ;;  %1894 = vst [vmem:[%s2658_s15 + $0x58] sm:$0xff] %v1862_v8   ;;  %v2058_v9 = vunpack.i.h.bf16 %v2054_v10  ;;  %v2055_v11 = vunpack.i.l.bf16 %v2054_v10 }
 0x243   : > { %v2059_v12 = vpop.trf.xlu0 }
 0x244   : > { %v2063_v13 = vunpack.i.h.bf16 %v2059_v12  ;;  %v2060_v14 = vunpack.i.l.bf16 %v2059_v12 }
 0x246   : > { %v1827_v0 = vpack.c.bf16 %v2060_v14, %v2055_v11  ;;  %v1867_v16 = vpack.c.bf16 %v2063_v13, %v2058_v9 }
 0x247   : > { %v2064_v17 = vpop.trf.xlu0 }
 0x248   : > { %1887 = vst [vmem:[%s2658_s15 + $0x20] sm:$0xff] %v1827_v0   ;;  %1895 = vst [vmem:[%s2658_s15 + $0x60] sm:$0xff] %v1867_v16   ;;  %v2068_v18 = vunpack.i.h.bf16 %v2064_v17  ;;  %v2065_v19 = vunpack.i.l.bf16 %v2064_v17 }
 0x24b   : > { %v2069_v20 = vpop.trf.xlu0 }
 0x24c   : > { %v2073_v15 = vunpack.i.h.bf16 %v2069_v20  ;;  %v2070_v21 = vunpack.i.l.bf16 %v2069_v20 }
 0x24e   : > { %v1832_v22 = vpack.c.bf16 %v2070_v21, %v2065_v19  ;;  %v1872_v23 = vpack.c.bf16 %v2073_v15, %v2068_v18 }
 0x24f   : > { %v2074_v24 = vpop.trf.xlu0 }
 0x250   : > { %1888 = vst [vmem:[%s2658_s15 + $0x28] sm:$0xff] %v1832_v22   ;;  %1896 = vst [vmem:[%s2658_s15 + $0x68] sm:$0xff] %v1872_v23   ;;  %v2078_v42 = vunpack.i.h.bf16 %v2074_v24  ;;  %v2075_v26 = vunpack.i.l.bf16 %v2074_v24 }
 0x253   : > { %v2079_v27 = vpop.trf.xlu0 }
 0x254   : > { %v2083_v25 = vunpack.i.h.bf16 %v2079_v27  ;;  %v2080_v28 = vunpack.i.l.bf16 %v2079_v27 }
 0x256   : > { %v1837_v29 = vpack.c.bf16 %v2080_v28, %v2075_v26  ;;  %v1877_v31 = vpack.c.bf16 %v2083_v25, %v2078_v42 }
 0x257   : > { %v2084_v32 = vpop.trf.xlu0 }
 0x258   : > { %1889 = vst [vmem:[%s2658_s15 + $0x30] sm:$0xff] %v1837_v29   ;;  %1897 = vst [vmem:[%s2658_s15 + $0x70] sm:$0xff] %v1877_v31   ;;  %v2088_v33 = vunpack.i.h.bf16 %v2084_v32  ;;  %v2085_v34 = vunpack.i.l.bf16 %v2084_v32 }
 0x25b   : > { %v2089_v43 = vpop.trf.xlu0 }
 0x25c   : > { %v2093_v35 = vunpack.i.h.bf16 %v2089_v43  ;;  %v2090_v30 = vunpack.i.l.bf16 %v2089_v43 }
 0x25e   : > { %v1842_v36 = vpack.c.bf16 %v2090_v30, %v2085_v34  ;;  %v1882_v37 = vpack.c.bf16 %v2093_v35, %v2088_v33 }
 0x260   : > { %1890 = vst [vmem:[%s2658_s15 + $0x38] sm:$0xff] %v1842_v36   ;;  %1898 = vst [vmem:[%s2658_s15 + $0x78] sm:$0xff] %v1882_v37  }
 0x261   : > { %2149 = shalt.err (!%p2146_p7)
}
 0x262   : > { %s2150_s27 = scalar_lea.hbm %s2680_s30, 2048  ;;  %s2154_s15 = scalar_lea.hbm %s2737_s6, 4096 }
 0x263   : > { %p2151_p9 = scmp.ne.s32.totalorder %s2680_s30, %s2150_s27  ;;  %p2155_p12 = scmp.lt.s32.totalorder %s2680_s30, %s2737_s6 }
 0x264   : > { %p2156_p13 = scmp.lt.s32.totalorder %s2154_s15, %s2150_s27 }
 0x265   : > { %p2152_p10 = pnand %p2151_p9, %p2300_p4 }
 0x266   : > { %p2157_p0 = por %p2156_p13, %p2155_p12 }
 0x267   : > { %p2153_p11 = pneg %p2152_p10 }
 0x269   : > { %p2158_p1 = pnand %p2157_p0, %p2153_p11 }
 0x26b   : > { %2161 = shalt.err (!%p2158_p1)
}
 0x26c   : > { %s2223_s11 = smov 64   ;;  %s2224_s14 = smov 4  }
 0x26d   : > { %1916 = dma.vmem_to_hbm [thread:$0]  (%p2300_p4), %s2682_s13, 2048, %s2680_s30, %s1495_s8, %s2223_s11, %s2223_s11, %s2224_s14  }
 0x26e PF: > { %p1926_p2 = scmp.ge.s32.totalorder %s2216_s26, 2  ;;  %s1543_s24 = sand.u32 1, %s2196_s21  }
 0x26f   : > { %s1544_s17 = scalar_lea.sflag [#allocation3], %s1543_s24 }
 0x270   : > { %p1920_p3 = pnand %p1926_p2, %p2307_p8 }
 0x272   : > { %p1921_p5 = pneg %p1920_p3 }
 0x274   : > { %2187 = dma.done.wait (%p1921_p5), %s1544_s17, 2048  }
 0x275   : > { %2189 = vsyncadd (%p1921_p5), %s1544_s17, 4294965248  ;;  %s1553_s18 = scalar_lea.sflag [#allocation5], %s1543_s24 }
 0x276   : > { %2191 = dma.done.wait (%p1921_p5), %s1553_s18, 2048  }
 0x277   : > { %2193 = vsyncadd (%p1921_p5), %s1553_s18, 4294965248  ;;  %s23_s26 = sadd.s32 1, %s2216_s26   ;;  %s2742_s21 = smov %s2200_s22 }
 0x278   : > { %p20_p6 = scmp.ge.s32.totalorder %s23_s26, 4   ;;  %s2743_s22 = smov %s2204_s23 }
 0x279   : > { %s2744_s23 = smov %s2313_s10  ;;  %s2745_s24 = smov %s2212_s25 }
 0x27a   : > { %s2746_s25 = smov %s2748_s29  ;;  %22 = sbr.rel (!%p20_p6) target bundleno = 6 (0x6), region = 98 }
 0x27f   :  { %1558 = vsyncpa [#allocation3], 1 }
 0x280   :  { %1560 = vsyncpa [#allocation3 + $0x1], 1 }
 0x281   :  { %1561 = vsyncpa [#allocation5], 1 }
 0x282   :  { %1563 = vsyncpa [#allocation5 + $0x1], 1 }

</bundles_post_ra>
